<compile_context>
chip_gen: v7x
topology: tpu7x:2x2x1
jax: 0.10.0
libtpu: 0.0.40
codegen_flags: <defaults>
</compile_context>

<pallas_src>
import functools

import jax
import jax.numpy as jnp
from jax.experimental import pallas as pl
from jax.experimental.pallas import tpu as pltpu


def _round_up(x, m):
    return ((x + m - 1) // m) * m


_SMALL_BATCH = 1024   # up to this many rows: one tile, one grid step
_TILE_CAP = 4096      # target max rows per tile for large batches


def _choose_batch_tile(B):
    """Pick a batch tile: one tile for small B; for large B an even number of grid steps
    (>= 2) so both v7x TensorCores get equal work, with tiles of up to ~_TILE_CAP rows."""
    if B <= _SMALL_BATCH:
        return B
    n_steps = 2 * pl.cdiv(B, 2 * _TILE_CAP)       # even step count
    return _round_up(pl.cdiv(B, n_steps), 8)


def policy_kernel(x_ref, w1_ref, b1_ref, w2_ref, b2_ref, w3_ref, b3_ref,
                  out_ref, *, max_action):
    """Whole MLP hot path (3 matmuls + ReLU + tanh) for one batch tile, all in VMEM.

    Weights/biases are resident (untiled VMEM refs); only x / out are tiled over the batch.
    """
    x = x_ref[...]

    h1 = jnp.dot(x, w1_ref[...], preferred_element_type=jnp.float32) + b1_ref[...]
    h1 = jnp.maximum(h1, 0.0)

    h2 = jnp.dot(h1, w2_ref[...], preferred_element_type=jnp.float32) + b2_ref[...]
    h2 = jnp.maximum(h2, 0.0)

    a = jnp.dot(h2, w3_ref[...], preferred_element_type=jnp.float32) + b3_ref[...]
    # tanh on the EUP, scale on the VPU; keep the epilogue in f32 (safe on v5e too).
    out_ref[...] = (max_action * jnp.tanh(a)).astype(out_ref.dtype)


def policy_forward(state, params, max_action, *, batch_tile=None):
    """state: [B, state_dim] float32. Returns [B, action_dim] float32."""
    w1, b1, w2, b2, w3, b3 = params
    B, state_dim = state.shape
    action_dim = w3.shape[1]

    if batch_tile is None:
        batch_tile = _choose_batch_tile(B)
    # Multi-tile blocks must have a sublane-multiple (8) batch dim; a single full-batch
    # block is always legal because the block dim equals the full array dim.
    batch_tile = _round_up(max(int(batch_tile), 1), 8)
    if batch_tile >= B:
        batch_tile = B

    grid = (pl.cdiv(B, batch_tile),)
    kernel = functools.partial(policy_kernel, max_action=float(max_action))

    # Only x and out are pipelined over the grid; weights/biases are resident in VMEM.
    resident = pl.BlockSpec(memory_space=pltpu.MemorySpace.VMEM)
    in_specs = [
        pl.BlockSpec((batch_tile, state_dim), lambda i: (i, 0)),  # x tile
        resident,  # W1
        resident,  # b1
        resident,  # W2
        resident,  # b2
        resident,  # W3
        resident,  # b3
    ]
    # Out block last dim == full array dim (action_dim) -> legal and no lane padding,
    # so the bytes written back to HBM are exactly the action tensor.
    out_specs = pl.BlockSpec((batch_tile, action_dim), lambda i: (i, 0))

    out = pl.pallas_call(
        kernel,
        out_shape=jax.ShapeDtypeStruct((B, action_dim), jnp.float32),
        grid=grid,
        in_specs=in_specs,
        out_specs=out_specs,
        compiler_params=pltpu.CompilerParams(
            dimension_semantics=("parallel",),
        ),
    )(state, w1, b1, w2, b2, w3, b3)

    return out


def init_policy_params(key, state_dim, action_dim, hidden=32):
    """Deterministic init matching torch.nn.Linear default: U(-1/sqrt(fan_in), 1/sqrt(fan_in))."""
    keys = jax.random.split(key, 6)

    def linear(kw, kb, fan_in, fan_out):
        bound = 1.0 / jnp.sqrt(jnp.float32(fan_in))
        w = jax.random.uniform(kw, (fan_in, fan_out), jnp.float32, -bound, bound)
        b = jax.random.uniform(kb, (1, fan_out), jnp.float32, -bound, bound)
        return w, b

    w1, b1 = linear(keys[0], keys[1], state_dim, hidden)
    w2, b2 = linear(keys[2], keys[3], hidden, hidden)
    w3, b3 = linear(keys[4], keys[5], hidden, action_dim)
    return (w1, b1, w2, b2, w3, b3)


def policy_reference(state, params, max_action):
    """Pure-JAX reference for correctness checking."""
    w1, b1, w2, b2, w3, b3 = params
    h1 = jnp.maximum(state @ w1 + b1, 0.0)
    h2 = jnp.maximum(h1 @ w2 + b2, 0.0)
    return max_action * jnp.tanh(h2 @ w3 + b3)


if __name__ == "__main__":
    key = jax.random.PRNGKey(0)
    k_params, k_state = jax.random.split(key)

    B, STATE_DIM, ACTION_DIM, HIDDEN = 8, 16, 4, 32
    MAX_ACTION = 2.0

    params = init_policy_params(k_params, STATE_DIM, ACTION_DIM, HIDDEN)
    state = jax.random.normal(k_state, (B, STATE_DIM), jnp.float32)

    out = policy_forward(state, params, MAX_ACTION)
    out = jax.block_until_ready(out)

    ref = policy_reference(state, params, MAX_ACTION)
    assert out.shape == (B, ACTION_DIM)
    assert jnp.allclose(out, ref, atol=1e-5, rtol=1e-5)

    # Non-divisible "replay buffer"-style batch size (single ragged block).
    state_odd = jax.random.normal(jax.random.PRNGKey(1), (5, STATE_DIM), jnp.float32)
    out_odd = jax.block_until_ready(policy_forward(state_odd, params, MAX_ACTION))
    ref_odd = policy_reference(state_odd, params, MAX_ACTION)
    assert out_odd.shape == (5, ACTION_DIM)
    assert jnp.allclose(out_odd, ref_odd, atol=1e-5, rtol=1e-5)

    # Multi-step grid with a ragged LAST block (300 rows, tile 128 -> 3 steps, tail of 44),
    # exercising the no-pad cdiv-grid path and the writeback clipping of the edge block.
    state_big = jax.random.normal(jax.random.PRNGKey(2), (300, STATE_DIM), jnp.float32)
    out_big = jax.block_until_ready(
        policy_forward(state_big, params, MAX_ACTION, batch_tile=128))
    ref_big = policy_reference(state_big, params, MAX_ACTION)
    assert out_big.shape == (300, ACTION_DIM)
    assert jnp.allclose(out_big, ref_big, atol=1e-5, rtol=1e-5)

    print("KERNEL_OK")
</pallas_src>

<mosaic_0001>
module attributes {stable_mosaic.version = 11 : i64} {
  func.func @policy_kernel(%arg0: i32, %arg1: memref<8x16xf32, #tpu.memory_space<vmem>>, %arg2: memref<16x32xf32, #tpu.memory_space<vmem>>, %arg3: memref<1x32xf32, #tpu.memory_space<vmem>>, %arg4: memref<32x32xf32, #tpu.memory_space<vmem>>, %arg5: memref<1x32xf32, #tpu.memory_space<vmem>>, %arg6: memref<32x4xf32, #tpu.memory_space<vmem>>, %arg7: memref<1x4xf32, #tpu.memory_space<vmem>>, %arg8: memref<8x4xf32, #tpu.memory_space<vmem>>) attributes {dimension_semantics = [#tpu.dimension_semantics<parallel>], iteration_bounds = array<i64: 1>, scalar_prefetch = 0 : i64, scratch_operands = 0 : i64, tpu.core_type = #tpu.core_type<tc>, window_params = [{transform_indices = @transform_0, window_bounds = array<i64: 8, 16>}, {pipeline_mode = #tpu.pipeline_mode<synchronous>, transform_indices = @transform_1, window_bounds = array<i64: 16, 32>}, {pipeline_mode = #tpu.pipeline_mode<synchronous>, transform_indices = @transform_2, window_bounds = array<i64: 1, 32>}, {pipeline_mode = #tpu.pipeline_mode<synchronous>, transform_indices = @transform_3, window_bounds = array<i64: 32, 32>}, {pipeline_mode = #tpu.pipeline_mode<synchronous>, transform_indices = @transform_4, window_bounds = array<i64: 1, 32>}, {pipeline_mode = #tpu.pipeline_mode<synchronous>, transform_indices = @transform_5, window_bounds = array<i64: 32, 4>}, {pipeline_mode = #tpu.pipeline_mode<synchronous>, transform_indices = @transform_6, window_bounds = array<i64: 1, 4>}, {transform_indices = @transform_7, window_bounds = array<i64: 8, 4>}]} {
    %c0 = arith.constant 0 : index
    %c0_0 = arith.constant 0 : index
    %0 = vector.load %arg1[%c0, %c0_0] : memref<8x16xf32, #tpu.memory_space<vmem>>, vector<8x16xf32>
    %c0_1 = arith.constant 0 : index
    %c0_2 = arith.constant 0 : index
    %1 = vector.load %arg2[%c0_1, %c0_2] : memref<16x32xf32, #tpu.memory_space<vmem>>, vector<16x32xf32>
    %cst = arith.constant dense<0.000000e+00> : vector<8x32xf32>
    %2 = tpu.matmul %0, %1, %cst {dimension_numbers = #tpu.dot_dimension_numbers<[1], [0], [0], [1], [0, 0, 1, 1], [], []>} : vector<8x16xf32>, vector<16x32xf32>, vector<8x32xf32> -> vector<8x32xf32>
    %c0_3 = arith.constant 0 : index
    %c0_4 = arith.constant 0 : index
    %3 = vector.load %arg3[%c0_3, %c0_4] : memref<1x32xf32, #tpu.memory_space<vmem>>, vector<1x32xf32>
    %4 = vector.broadcast %3 : vector<1x32xf32> to vector<8x32xf32>
    %5 = arith.addf %2, %4 : vector<8x32xf32>
    %cst_5 = arith.constant 0.000000e+00 : f32
    %6 = vector.broadcast %cst_5 : f32 to vector<8x32xf32>
    %7 = arith.maximumf %5, %6 : vector<8x32xf32>
    %c0_6 = arith.constant 0 : index
    %c0_7 = arith.constant 0 : index
    %8 = vector.load %arg4[%c0_6, %c0_7] : memref<32x32xf32, #tpu.memory_space<vmem>>, vector<32x32xf32>
    %cst_8 = arith.constant dense<0.000000e+00> : vector<8x32xf32>
    %9 = tpu.matmul %7, %8, %cst_8 {dimension_numbers = #tpu.dot_dimension_numbers<[1], [0], [0], [1], [0, 0, 1, 1], [], []>} : vector<8x32xf32>, vector<32x32xf32>, vector<8x32xf32> -> vector<8x32xf32>
    %c0_9 = arith.constant 0 : index
    %c0_10 = arith.constant 0 : index
    %10 = vector.load %arg5[%c0_9, %c0_10] : memref<1x32xf32, #tpu.memory_space<vmem>>, vector<1x32xf32>
    %11 = vector.broadcast %10 : vector<1x32xf32> to vector<8x32xf32>
    %12 = arith.addf %9, %11 : vector<8x32xf32>
    %cst_11 = arith.constant 0.000000e+00 : f32
    %13 = vector.broadcast %cst_11 : f32 to vector<8x32xf32>
    %14 = arith.maximumf %12, %13 : vector<8x32xf32>
    %c0_12 = arith.constant 0 : index
    %c0_13 = arith.constant 0 : index
    %15 = vector.load %arg6[%c0_12, %c0_13] : memref<32x4xf32, #tpu.memory_space<vmem>>, vector<32x4xf32>
    %cst_14 = arith.constant dense<0.000000e+00> : vector<8x4xf32>
    %16 = tpu.matmul %14, %15, %cst_14 {dimension_numbers = #tpu.dot_dimension_numbers<[1], [0], [0], [1], [0, 0, 1, 1], [], []>} : vector<8x32xf32>, vector<32x4xf32>, vector<8x4xf32> -> vector<8x4xf32>
    %c0_15 = arith.constant 0 : index
    %c0_16 = arith.constant 0 : index
    %17 = vector.load %arg7[%c0_15, %c0_16] : memref<1x4xf32, #tpu.memory_space<vmem>>, vector<1x4xf32>
    %18 = vector.broadcast %17 : vector<1x4xf32> to vector<8x4xf32>
    %19 = arith.addf %16, %18 : vector<8x4xf32>
    %20 = math.tanh %19 : vector<8x4xf32>
    %cst_17 = arith.constant 2.000000e+00 : f32
    %21 = vector.broadcast %cst_17 : f32 to vector<8x4xf32>
    %22 = arith.mulf %21, %20 : vector<8x4xf32>
    %c0_18 = arith.constant 0 : index
    %c0_19 = arith.constant 0 : index
    %23 = vector.load %arg8[%c0_18, %c0_19] : memref<8x4xf32, #tpu.memory_space<vmem>>, vector<8x4xf32>
    tpu.vector_store %arg8[%c0_18, %c0_19], %22 {strides = array<i32>} : memref<8x4xf32, #tpu.memory_space<vmem>>, vector<8x4xf32>,
    return
  }
  func.func @transform_0(%arg0: i32) -> (i32, i32) {
    %c0_i32 = arith.constant 0 : i32
    %c0_i32_0 = arith.constant 0 : i32
    return %arg0, %c0_i32 : i32, i32
  }
  func.func @transform_1(%arg0: i32) -> (i32, i32) {
    %c0_i32 = arith.constant 0 : i32
    %c0_i32_0 = arith.constant 0 : i32
    %c0_i32_1 = arith.constant 0 : i32
    return %c0_i32, %c0_i32_0 : i32, i32
  }
  func.func @transform_2(%arg0: i32) -> (i32, i32) {
    %c0_i32 = arith.constant 0 : i32
    %c0_i32_0 = arith.constant 0 : i32
    %c0_i32_1 = arith.constant 0 : i32
    return %c0_i32, %c0_i32_0 : i32, i32
  }
  func.func @transform_3(%arg0: i32) -> (i32, i32) {
    %c0_i32 = arith.constant 0 : i32
    %c0_i32_0 = arith.constant 0 : i32
    %c0_i32_1 = arith.constant 0 : i32
    return %c0_i32, %c0_i32_0 : i32, i32
  }
  func.func @transform_4(%arg0: i32) -> (i32, i32) {
    %c0_i32 = arith.constant 0 : i32
    %c0_i32_0 = arith.constant 0 : i32
    %c0_i32_1 = arith.constant 0 : i32
    return %c0_i32, %c0_i32_0 : i32, i32
  }
  func.func @transform_5(%arg0: i32) -> (i32, i32) {
    %c0_i32 = arith.constant 0 : i32
    %c0_i32_0 = arith.constant 0 : i32
    %c0_i32_1 = arith.constant 0 : i32
    return %c0_i32, %c0_i32_0 : i32, i32
  }
  func.func @transform_6(%arg0: i32) -> (i32, i32) {
    %c0_i32 = arith.constant 0 : i32
    %c0_i32_0 = arith.constant 0 : i32
    %c0_i32_1 = arith.constant 0 : i32
    return %c0_i32, %c0_i32_0 : i32, i32
  }
  func.func @transform_7(%arg0: i32) -> (i32, i32) {
    %c0_i32 = arith.constant 0 : i32
    %c0_i32_0 = arith.constant 0 : i32
    return %arg0, %c0_i32 : i32, i32
  }
}

</mosaic_0001>

<bundles_post_ra>
// kernel: tpu_custom_call.1
= control target key start
LH: loop header
LB: loop body
LE: loop exit
PB: predicated region body
PF: predicated region fallthrough
CT: control target
= control target key end

     0   :  { %12 = vsyncpa [#allocation3], 0  ;;  %s399_s24 = smov [#allocation2]   ;;  %s499_s0 = inlined_call_operand.vmem [shape: f32[8,16], index: 0, kind: input, shape index: {}]   ;;  %s500_s1 = inlined_call_operand.hbm [shape: f32[16,32], index: 1, kind: input, shape index: {}]   ;;  %s501_s2 = inlined_call_operand.vmem [shape: f32[1,32], index: 2, kind: input, shape index: {}]   ;;  %s502_s3 = inlined_call_operand.vmem [shape: f32[32,32], index: 3, kind: input, shape index: {}]   ;;  %s503_s4 = inlined_call_operand.vmem [shape: f32[1,32], index: 4, kind: input, shape index: {}]   ;;  %s504_s5 = inlined_call_operand.vmem [shape: f32[32,4], index: 5, kind: input, shape index: {}]   ;;  %s505_s6 = inlined_call_operand.vmem [shape: f32[1,4], index: 6, kind: input, shape index: {}]   ;;  %s506_s7 = inlined_call_operand.vmem [shape: f32[8,4], index: 7, kind: output, shape index: {}]  }
   0x1   :  { %s20_s25 = sshll.u32 %s399_s24, 4  ;;  %s375_s28 = scalar_lea.hbm %s500_s1, 256  ;;  %s21_s25 = int_to_ptr.vmem [resolvable:$true] %s20_s25 }
   0x2   :  { %p376_p0 = scmp.ne.s32.totalorder %s500_s1, %s375_s28  ;;  %p379_p1 = scmp.lt.u32.totalorder %s375_s28, %s500_s1 }
   0x4   :  { %p381_p2 = pnand %p379_p1, %p376_p0 }
   0x6   :  { %384 = shalt.err (!%p381_p2)
}
   0x7   :  { %s385_s10 = scalar_lea.vmem %s21_s25, 256  ;;  %p390_p4 = scmp.lt.s32.totalorder %s21_s25, %s21_s25 }
   0x8   :  { %p386_p3 = scmp.ne.s32.totalorder %s21_s25, %s385_s10  ;;  %p391_p5 = scmp.lt.s32.totalorder %s385_s10, %s385_s10 }
   0xa   :  { %p392_p6 = por %p391_p5, %p390_p4 }
   0xc   :  { %p393_p7 = pnand %p392_p6, %p386_p3 }
   0xe   :  { %396 = shalt.err (!%p393_p7)
}
   0xf   :  { %s400_s11 = smov 128   ;;  %s401_s12 = smov 8  }
  0x10   :  { %26 = dma.hbm_to_vmem [thread:$0]  %s500_s1, 256, %s21_s25, [#allocation3], %s400_s11, %s400_s11, %s401_s12  }
  0x11   :  { %397 = dma.done.wait [#allocation3], 256  }
  0x12   :  { %398 = vsyncadd [#allocation3], 4294967040  ;;  %v402_v0 = vmov 0.0|0.0   ;;  %vm403_vm0 = vmmov 0   ;;  %v404_v1 = vmov 0.0   ;;  %v41_v2 = vld [vmem:[#allocation2] sm:$0xff] }
  0x13   :  { %352 = vmatprep.subr.bf16.mxu0 %v402_v0  ;;  %327 = vmatprep.mubr.msk.f32.mxu0 %vm403_vm0, %v404_v1  ;;  %v42_v3 = vld [vmem:[#allocation2 + $0x8] sm:$0xff]  ;;  %v125_v5 = vld [vmem:[%s502_s3] sm:$0xff]  ;;  %vm50_vm1 = vcmask 130048   ;;  %v127_v9 = vld [vmem:[%s502_s3 + $0x10] sm:$0xff]  ;;  %vm136_vm2 = vcmask 261120   ;;  %vm297_vm3 = vcmask 31744  }
  0x14   :  { %355 = vmatprep.subr.bf16.mxu1 %v402_v0  ;;  %338 = vmatprep.mubr.msk.f32.mxu1 %vm403_vm0, %v404_v1  ;;  %v353_v4 = vpack.c.bf16 %v42_v3, %v41_v2  ;;  %v126_v6 = vld [vmem:[%s502_s3 + $0x8] sm:$0xff]  ;;  %v40_v8 = vld [vmem:[%s499_s0] sm:$0xff]  ;;  %v128_v10 = vld [vmem:[%s502_s3 + $0x18] sm:$0xff] }
  0x15   :  { %v356_v7 = vpack.c.bf16 %v126_v6, %v125_v5  ;;  %v359_v11 = vpack.c.bf16 %v128_v10, %v127_v9  ;;  %v211_v12 = vld [vmem:[%s504_s5] sm:$0xff]  ;;  %v212_v13 = vld [vmem:[%s504_s5 + $0x8] sm:$0xff]  ;;  %v213_v20 = vld [vmem:[%s504_s5 + $0x10] sm:$0xff] }
  0x16   :  { %354 = vmatpush3.bf16.msra.mxu0 %v353_v4  ;;  %v362_v14 = vpack.c.bf16 %v212_v13, %v211_v12  ;;  %v304_v15 = vld [vmem:[%s501_s2] ss:$0 sm:$0xff]  ;;  %v214_v21 = vld [vmem:[%s504_s5 + $0x18] sm:$0xff] }
  0x17   :  { %357 = vmatpush3.bf16.msra.mxu1 %v356_v7  ;;  %361 = vmatprep.subr.bf16.mxu0 %v402_v0  ;;  %v365_v22 = vpack.c.bf16 %v214_v21, %v213_v20  ;;  %v306_v23 = vld [vmem:[%s503_s4] ss:$0 sm:$0xff] }
  0x18   :  { %358 = vmatprep.subr.bf16.mxu1 %v402_v0  ;;  %v308_v28 = vld [vmem:[%s505_s6] ss:$0 sm:$0xff] }
  0x19   :  { %328 = vmatmul.mubr.msk.f32.vlgmr.msra.gmra.mrb[0].mxu0 %vm50_vm1, %v40_v8 }
  0x1a   :  { %349 = vmatprep.mubr.msk.f32.mxu0 %vm403_vm0, %v404_v1  ;;  %363 = vmatpush3.bf16.msra.mxu0 %v362_v14 }
  0x1b   :  { %360 = vmatpush3.bf16.msra.mxu1 %v359_v11  ;;  %364 = vmatprep.subr.bf16.mxu0 %v402_v0 }
  0x1e   :  { %366 = vmatpush3.bf16.msra.mxu0 %v365_v22 }
  0xec   :  { %v120_v16 = vpop.f32.mrb[0].mxu0 }
  0xed   :  { %v121_v17 = vadd.f32 %v304_v15, %v120_v16  ;;  %v329_v18 = vpop.f32.mrb[1].mxu0 }
  0xef   :  { %v124_v19 = vmax.f32 %v121_v17, 0.0 }
  0xf1   :  { %339 = vmatmul.mubr.msk.f32.vlgmr.msra.gmra.mrb[0].mxu1 %vm136_vm2, %v124_v19 }
 0x1c4   :  { %v206_v24 = vpop.f32.mrb[0].mxu1 }
 0x1c5   :  { %v207_v25 = vadd.f32 %v306_v23, %v206_v24  ;;  %v340_v26 = vpop.f32.mrb[1].mxu1 }
 0x1c7   :  { %v210_v27 = vmax.f32 %v207_v25, 0.0 }
 0x1c9   :  { %350 = vmatmul.mubr.msk.f32.vlgmr.msra.gmra.mrb[2].mxu0 %vm136_vm2, %v210_v27 }
 0x29c   :  { %v291_v29 = vpop.f32.mrb[2].mxu0 }
 0x29d   :  { %v292_v30 = vadd.f32 %v308_v28, %v291_v29  ;;  %v351_v31 = vpop.f32.mrb[3].mxu0 }
 0x29f   :  { %373 = vtanh.f32 %v292_v30 }
 0x2a9   :  { %v374_v32 = vpop.eup %373 }
 0x2aa   :  { %v296_v33 = vmul.f32 2.0, %v374_v32 }
 0x2ac   :  { %298 = vst.msk [vmem:[%s506_s7] sm:$0xff] %vm297_vm3, %v296_v33 }
 0x2ad   :  { %303 = vsyncpa [#allocation3], 1 }

</bundles_post_ra>
